<compile_context>
chip_gen: v6e
topology: v6e:2x2x1
jax: 0.10.0
libtpu: 0.0.40
codegen_flags: <defaults>
</compile_context>

<pallas_src>
import jax
import jax.numpy as jnp
from jax.experimental import pallas as pl
from jax.experimental.pallas import tpu as pltpu

N_EMBD = 80
HIDDEN = 4 * N_EMBD      # 320
C_PAD = 128              # lane-dense padded embedding dim
H_PAD = 384              # lane-dense padded hidden dim (multiple of 128)
DROPOUT = 0.0            # p=0.0 -> identity; no RNG needed.


def ffn_kernel(x_ref, w1_ref, b1_ref, w2_ref, b2_ref, o_ref):
    # x_ref:  (TM, C_PAD)   f32 token tile (zero-padded lanes)
    # w1_ref: (C_PAD, H_PAD) bf16, zero-padded
    # b1_ref: (1, H_PAD)     f32, zero-padded
    # w2_ref: (H_PAD, C_PAD) bf16, zero-padded
    # b2_ref: (1, C_PAD)     f32, zero-padded
    # o_ref:  (TM, C_PAD)    f32
    x = x_ref[...].astype(jnp.bfloat16)
    h = jnp.dot(x, w1_ref[...], preferred_element_type=jnp.float32)
    h = jnp.maximum(h + b1_ref[...], 0.0)                       # bias + ReLU in f32
    y = jnp.dot(h.astype(jnp.bfloat16), w2_ref[...],
                preferred_element_type=jnp.float32)
    y = y + b2_ref[...]
    # Dropout(p=0.0) == identity, nothing to do.
    o_ref[...] = y.astype(o_ref.dtype)


def feed_forward(x, w1, b1, w2, b2, *, tm=512):
    """x: (B, T, C) float32; w1: (C, 4C); b1: (4C,); w2: (4C, C); b2: (C,).
    Returns (B, T, C) float32."""
    B, T, C = x.shape
    assert C == N_EMBD
    BT = B * T

    # Row tile: at most `tm`, at least a multiple of 8 rows (sublane constraint).
    tm_eff = min(tm, int(pl.cdiv(BT, 8)) * 8)
    rows = int(pl.cdiv(BT, tm_eff)) * tm_eff       # pad rows to a grid multiple

    # Zero-pad everything to lane-dense shapes (done once outside the kernel).
    x2d = x.reshape(BT, C)
    x_p = jnp.pad(x2d, ((0, rows - BT), (0, C_PAD - C)))
    w1_p = jnp.pad(w1, ((0, C_PAD - C), (0, H_PAD - HIDDEN))).astype(jnp.bfloat16)
    b1_p = jnp.pad(b1, (0, H_PAD - HIDDEN)).reshape(1, H_PAD)
    w2_p = jnp.pad(w2, ((0, H_PAD - HIDDEN), (0, C_PAD - C))).astype(jnp.bfloat16)
    b2_p = jnp.pad(b2, (0, C_PAD - C)).reshape(1, C_PAD)

    grid = (rows // tm_eff,)

    out = pl.pallas_call(
        ffn_kernel,
        out_shape=jax.ShapeDtypeStruct((rows, C_PAD), x.dtype),
        grid=grid,
        in_specs=[
            pl.BlockSpec((tm_eff, C_PAD), lambda i: (i, 0)),   # x tile (pipelined)
            pl.BlockSpec((C_PAD, H_PAD), lambda i: (0, 0)),    # w1 (VMEM-resident)
            pl.BlockSpec((1, H_PAD), lambda i: (0, 0)),        # b1
            pl.BlockSpec((H_PAD, C_PAD), lambda i: (0, 0)),    # w2
            pl.BlockSpec((1, C_PAD), lambda i: (0, 0)),        # b2
        ],
        out_specs=pl.BlockSpec((tm_eff, C_PAD), lambda i: (i, 0)),
        compiler_params=pltpu.CompilerParams(
            dimension_semantics=("parallel",),                 # shard rows on v7x cores
        ),
    )(x_p, w1_p, b1_p, w2_p, b2_p)

    return out[:BT, :C].reshape(B, T, C)


def init_params(key):
    """Deterministic init matching nn.Linear's default U(-1/sqrt(fan_in), +)."""
    k1, k2, k3, k4 = jax.random.split(key, 4)
    bound1 = 1.0 / jnp.sqrt(jnp.float32(N_EMBD))
    bound2 = 1.0 / jnp.sqrt(jnp.float32(HIDDEN))
    # Stored as (in, out) so the kernel does x @ W directly
    # (torch stores weight as (out, in) and computes x @ W.T -- same math).
    w1 = jax.random.uniform(k1, (N_EMBD, HIDDEN), jnp.float32, -bound1, bound1)
    b1 = jax.random.uniform(k2, (HIDDEN,), jnp.float32, -bound1, bound1)
    w2 = jax.random.uniform(k3, (HIDDEN, N_EMBD), jnp.float32, -bound2, bound2)
    b2 = jax.random.uniform(k4, (N_EMBD,), jnp.float32, -bound2, bound2)
    return w1, b1, w2, b2


if __name__ == "__main__":
    key = jax.random.PRNGKey(0)
    kx, kp = jax.random.split(key)

    B, T = 2, 8
    x = jax.random.normal(kx, (B, T, N_EMBD), jnp.float32)
    w1, b1, w2, b2 = init_params(kp)

    ff = jax.jit(feed_forward)
    y = jax.block_until_ready(ff(x, w1, b1, w2, b2))
    assert y.shape == (B, T, N_EMBD)

    # Reference 1: same bf16-weight / f32-accumulation recipe as the kernel.
    w1b = w1.astype(jnp.bfloat16)
    w2b = w2.astype(jnp.bfloat16)
    h_ref = jnp.maximum(
        jnp.dot(x.astype(jnp.bfloat16), w1b, preferred_element_type=jnp.float32) + b1,
        0.0,
    )
    ref_bf16 = jnp.dot(h_ref.astype(jnp.bfloat16), w2b,
                       preferred_element_type=jnp.float32) + b2
    assert jnp.allclose(y, ref_bf16, atol=2e-3, rtol=2e-3)

    # Reference 2: full-f32 PyTorch-equivalent math (looser tol for bf16 MXU inputs).
    ref_f32 = jnp.maximum(x @ w1 + b1, 0.0) @ w2 + b2
    assert jnp.allclose(y, ref_f32, atol=5e-2, rtol=5e-2)

    print("KERNEL_OK")
</pallas_src>

<mosaic_0001>
module attributes {stable_mosaic.version = 11 : i64} {
  func.func @ffn_kernel(%arg0: i32, %arg1: memref<16x128xf32, #tpu.memory_space<vmem>>, %arg2: memref<128x384xbf16, #tpu.memory_space<vmem>>, %arg3: memref<1x384xf32, #tpu.memory_space<vmem>>, %arg4: memref<384x128xbf16, #tpu.memory_space<vmem>>, %arg5: memref<1x128xf32, #tpu.memory_space<vmem>>, %arg6: memref<16x128xf32, #tpu.memory_space<vmem>>) attributes {dimension_semantics = [#tpu.dimension_semantics<parallel>], iteration_bounds = array<i64: 1>, scalar_prefetch = 0 : i64, scratch_operands = 0 : i64, tpu.core_type = #tpu.core_type<tc>, window_params = [{transform_indices = @transform_0, window_bounds = array<i64: 16, 128>}, {pipeline_mode = #tpu.pipeline_mode<synchronous>, transform_indices = @transform_1, window_bounds = array<i64: 128, 384>}, {pipeline_mode = #tpu.pipeline_mode<synchronous>, transform_indices = @transform_2, window_bounds = array<i64: 1, 384>}, {pipeline_mode = #tpu.pipeline_mode<synchronous>, transform_indices = @transform_3, window_bounds = array<i64: 384, 128>}, {pipeline_mode = #tpu.pipeline_mode<synchronous>, transform_indices = @transform_4, window_bounds = array<i64: 1, 128>}, {transform_indices = @transform_5, window_bounds = array<i64: 16, 128>}]} {
    %c0 = arith.constant 0 : index
    %c0_0 = arith.constant 0 : index
    %0 = vector.load %arg1[%c0, %c0_0] : memref<16x128xf32, #tpu.memory_space<vmem>>, vector<16x128xf32>
    %1 = arith.truncf %0 : vector<16x128xf32> to vector<16x128xbf16>
    %c0_1 = arith.constant 0 : index
    %c0_2 = arith.constant 0 : index
    %2 = vector.load %arg2[%c0_1, %c0_2] : memref<128x384xbf16, #tpu.memory_space<vmem>>, vector<128x384xbf16>
    %cst = arith.constant dense<0.000000e+00> : vector<16x384xf32>
    %3 = tpu.matmul %1, %2, %cst {dimension_numbers = #tpu.dot_dimension_numbers<[1], [0], [0], [1], [0, 0, 1, 1], [], []>} : vector<16x128xbf16>, vector<128x384xbf16>, vector<16x384xf32> -> vector<16x384xf32>
    %c0_3 = arith.constant 0 : index
    %c0_4 = arith.constant 0 : index
    %4 = vector.load %arg3[%c0_3, %c0_4] : memref<1x384xf32, #tpu.memory_space<vmem>>, vector<1x384xf32>
    %5 = vector.broadcast %4 : vector<1x384xf32> to vector<16x384xf32>
    %6 = arith.addf %3, %5 : vector<16x384xf32>
    %cst_5 = arith.constant 0.000000e+00 : f32
    %7 = vector.broadcast %cst_5 : f32 to vector<16x384xf32>
    %8 = arith.maximumf %6, %7 : vector<16x384xf32>
    %9 = arith.truncf %8 : vector<16x384xf32> to vector<16x384xbf16>
    %c0_6 = arith.constant 0 : index
    %c0_7 = arith.constant 0 : index
    %10 = vector.load %arg4[%c0_6, %c0_7] : memref<384x128xbf16, #tpu.memory_space<vmem>>, vector<384x128xbf16>
    %cst_8 = arith.constant dense<0.000000e+00> : vector<16x128xf32>
    %11 = tpu.matmul %9, %10, %cst_8 {dimension_numbers = #tpu.dot_dimension_numbers<[1], [0], [0], [1], [0, 0, 1, 1], [], []>} : vector<16x384xbf16>, vector<384x128xbf16>, vector<16x128xf32> -> vector<16x128xf32>
    %c0_9 = arith.constant 0 : index
    %c0_10 = arith.constant 0 : index
    %12 = vector.load %arg5[%c0_9, %c0_10] : memref<1x128xf32, #tpu.memory_space<vmem>>, vector<1x128xf32>
    %13 = vector.broadcast %12 : vector<1x128xf32> to vector<16x128xf32>
    %14 = arith.addf %11, %13 : vector<16x128xf32>
    %c0_11 = arith.constant 0 : index
    %c0_12 = arith.constant 0 : index
    %15 = vector.load %arg6[%c0_11, %c0_12] : memref<16x128xf32, #tpu.memory_space<vmem>>, vector<16x128xf32>
    tpu.vector_store %arg6[%c0_11, %c0_12], %14 {strides = array<i32>} : memref<16x128xf32, #tpu.memory_space<vmem>>, vector<16x128xf32>,
    return
  }
  func.func @transform_0(%arg0: i32) -> (i32, i32) {
    %c0_i32 = arith.constant 0 : i32
    %c0_i32_0 = arith.constant 0 : i32
    return %arg0, %c0_i32 : i32, i32
  }
  func.func @transform_1(%arg0: i32) -> (i32, i32) {
    %c0_i32 = arith.constant 0 : i32
    %c0_i32_0 = arith.constant 0 : i32
    %c0_i32_1 = arith.constant 0 : i32
    return %c0_i32, %c0_i32_0 : i32, i32
  }
  func.func @transform_2(%arg0: i32) -> (i32, i32) {
    %c0_i32 = arith.constant 0 : i32
    %c0_i32_0 = arith.constant 0 : i32
    %c0_i32_1 = arith.constant 0 : i32
    return %c0_i32, %c0_i32_0 : i32, i32
  }
  func.func @transform_3(%arg0: i32) -> (i32, i32) {
    %c0_i32 = arith.constant 0 : i32
    %c0_i32_0 = arith.constant 0 : i32
    %c0_i32_1 = arith.constant 0 : i32
    return %c0_i32, %c0_i32_0 : i32, i32
  }
  func.func @transform_4(%arg0: i32) -> (i32, i32) {
    %c0_i32 = arith.constant 0 : i32
    %c0_i32_0 = arith.constant 0 : i32
    %c0_i32_1 = arith.constant 0 : i32
    return %c0_i32, %c0_i32_0 : i32, i32
  }
  func.func @transform_5(%arg0: i32) -> (i32, i32) {
    %c0_i32 = arith.constant 0 : i32
    %c0_i32_0 = arith.constant 0 : i32
    return %arg0, %c0_i32 : i32, i32
  }
}

</mosaic_0001>

<bundles_post_ra>
// kernel: feed_forward.1
= control target key start
LH: loop header
LB: loop body
LE: loop exit
PB: predicated region body
PF: predicated region fallthrough
CT: control target
= control target key end

     0   :  { %v769_v0 = vmov 0.0   ;;  %vm770_vm0 = vmmov 0   ;;  %v771_v3 = vmov 0   ;;  %v58_v53 = vlaneseq  ;;  %s984_s1 = inlined_call_operand.vmem [shape: bf16[128,384], index: 1, kind: input, shape index: {}]   ;;  %s985_s3 = inlined_call_operand.vmem [shape: bf16[384,128], index: 3, kind: input, shape index: {}]   ;;  %s986_s0 = inlined_call_operand.vmem [shape: f32[16,128], index: 0, kind: input, shape index: {}]   ;;  %s987_s2 = inlined_call_operand.vmem [shape: f32[1,384], index: 2, kind: input, shape index: {}]   ;;  %s988_s4 = inlined_call_operand.vmem [shape: f32[1,128], index: 4, kind: input, shape index: {}]   ;;  %s989_s5 = inlined_call_operand.vmem [shape: f32[16,128], index: 5, kind: output, shape index: {}]  }
   0x1   :  { %670 = vmatprep.subr.bf16.mxu1 %v769_v0  ;;  %v713_v1 = vld [vmem:[%s984_s1 + $0xac] ss:$12 sps:$4 sm:$0xff]   ;;  %686 = vmatprep.mubr.msk.bf16.mxu1 %vm770_vm0, %v769_v0  ;;  %v715_v2 = vld [vmem:[%s984_s1 + $0xb0] ss:$12 sps:$4 sm:$0xff]   ;;  %v716_v4 = vld [vmem:[%s984_s1 + $0xa8] ss:$12 sps:$4 sm:$0xff]  }
   0x2   :  { %233 = vmatprep.mubr.bf16.mxu0 %v771_v3  ;;  %201 = vmatprep.subr.bf16.mxu0 %v713_v1  ;;  %v717_v5 = vld [vmem:[%s984_s1 + $0x94] ss:$12 sps:$4 sm:$0xff]   ;;  %v719_v6 = vld [vmem:[%s984_s1 + $0x98] ss:$12 sps:$4 sm:$0xff]   ;;  %v720_v7 = vld [vmem:[%s984_s1 + $0x90] ss:$12 sps:$4 sm:$0xff]  }
   0x3   :  { %671 = vmatpush3.bf16.msra.mxu1 %v715_v2  ;;  %202 = vmatpush1.bf16.msra.mxu0 %v716_v4  ;;  %v721_v8 = vld [vmem:[%s984_s1 + $0x7c] ss:$12 sps:$4 sm:$0xff]   ;;  %v723_v9 = vld [vmem:[%s984_s1 + $0x80] ss:$12 sps:$4 sm:$0xff]   ;;  %v724_v10 = vld [vmem:[%s984_s1 + $0x78] ss:$12 sps:$4 sm:$0xff]  }
   0x4   :  { %672 = vmatprep.subr.bf16.mxu1 %v769_v0  ;;  %203 = vmatprep.subr.bf16.mxu0 %v717_v5  ;;  %v725_v11 = vld [vmem:[%s984_s1 + $0x64] ss:$12 sps:$4 sm:$0xff]   ;;  %v727_v12 = vld [vmem:[%s984_s1 + $0x68] ss:$12 sps:$4 sm:$0xff]   ;;  %v728_v13 = vld [vmem:[%s984_s1 + $0x60] ss:$12 sps:$4 sm:$0xff]  }
   0x5   :  { %v729_v14 = vld [vmem:[%s984_s1 + $0x4c] ss:$12 sps:$4 sm:$0xff]   ;;  %v731_v15 = vld [vmem:[%s984_s1 + $0x50] ss:$12 sps:$4 sm:$0xff]   ;;  %v732_v16 = vld [vmem:[%s984_s1 + $0x48] ss:$12 sps:$4 sm:$0xff]  }
   0x6   :  { %v733_v17 = vld [vmem:[%s984_s1 + $0x34] ss:$12 sps:$4 sm:$0xff]   ;;  %v735_v18 = vld [vmem:[%s984_s1 + $0x38] ss:$12 sps:$4 sm:$0xff]   ;;  %v736_v19 = vld [vmem:[%s984_s1 + $0x30] ss:$12 sps:$4 sm:$0xff]  }
   0x7   :  { %673 = vmatpush3.bf16.msra.mxu1 %v719_v6  ;;  %204 = vmatpush1.bf16.msra.mxu0 %v720_v7  ;;  %v737_v20 = vld [vmem:[%s984_s1 + $0x1c] ss:$12 sps:$4 sm:$0xff]   ;;  %v739_v21 = vld [vmem:[%s984_s1 + $0x20] ss:$12 sps:$4 sm:$0xff]   ;;  %v740_v22 = vld [vmem:[%s984_s1 + $0x18] ss:$12 sps:$4 sm:$0xff]  }
   0x8   :  { %674 = vmatprep.subr.bf16.mxu1 %v769_v0  ;;  %205 = vmatprep.subr.bf16.mxu0 %v721_v8  ;;  %v741_v23 = vld [vmem:[%s984_s1 + $0x4] ss:$12 sps:$4 sm:$0xff]   ;;  %v743_v24 = vld [vmem:[%s984_s1 + $0x8] ss:$12 sps:$4 sm:$0xff]   ;;  %v744_v27 = vld [vmem:[%s984_s1] ss:$12 sps:$4 sm:$0xff]  }
   0x9   :  { %v21_v25 = vld [vmem:[%s986_s0] sm:$0xff]  ;;  %v22_v26 = vld [vmem:[%s986_s0 + $0x8] sm:$0xff]  ;;  %v746_v28 = vld [vmem:[%s985_s3 + $0x78] sm:$0xff]   ;;  %v59_v54 = vshrl.u32 %v58_v53, 7 }
   0xa   :  { %v23_v29 = vpack.c.bf16 %v22_v26, %v21_v25  ;;  %v745_v30 = vld [vmem:[%s985_s3 + $0xb8] sm:$0xff]   ;;  %v748_v32 = vld [vmem:[%s985_s3 + $0xb0] sm:$0xff]   ;;  %v752_v35 = vld [vmem:[%s985_s3 + $0x68] sm:$0xff]  }
   0xb   :  { %675 = vmatpush3.bf16.msra.mxu1 %v723_v9  ;;  %206 = vmatpush1.bf16.msra.mxu0 %v724_v10  ;;  %v747_v31 = vld [vmem:[%s985_s3 + $0x38] sm:$0xff]   ;;  %v749_v33 = vld [vmem:[%s985_s3 + $0x70] sm:$0xff]   ;;  %v751_v36 = vld [vmem:[%s985_s3 + $0xa8] sm:$0xff]   ;;  %v68_v55 = vsub.s32 2, %v59_v54  ;;  %v64_v58 = vsub.s32 1, %v59_v54  ;;  %v60_v59 = vsub.s32 0, %v59_v54 }
   0xc   :  { %676 = vmatprep.subr.bf16.mxu1 %v769_v0  ;;  %207 = vmatprep.subr.bf16.mxu0 %v725_v11  ;;  %v750_v34 = vld [vmem:[%s985_s3 + $0x30] sm:$0xff]   ;;  %v753_v37 = vld [vmem:[%s985_s3 + $0x28] sm:$0xff]   ;;  %v755_v38 = vld [vmem:[%s985_s3 + $0x60] sm:$0xff]  }
   0xd   :  { %v754_v39 = vld [vmem:[%s985_s3 + $0xa0] sm:$0xff]   ;;  %v758_v41 = vld [vmem:[%s985_s3 + $0x58] sm:$0xff]   ;;  %v760_v44 = vld [vmem:[%s985_s3 + $0x90] sm:$0xff]  }
   0xe   :  { %v756_v40 = vld [vmem:[%s985_s3 + $0x20] sm:$0xff]   ;;  %v757_v42 = vld [vmem:[%s985_s3 + $0x98] sm:$0xff]   ;;  %v761_v45 = vld [vmem:[%s985_s3 + $0x50] sm:$0xff]  }
   0xf   :  { %677 = vmatpush3.bf16.msra.mxu1 %v727_v12  ;;  %208 = vmatpush1.bf16.msra.mxu0 %v728_v13  ;;  %v759_v43 = vld [vmem:[%s985_s3 + $0x18] sm:$0xff]   ;;  %v762_v46 = vld [vmem:[%s985_s3 + $0x10] sm:$0xff]   ;;  %v763_v47 = vld [vmem:[%s985_s3 + $0x88] sm:$0xff]  }
  0x10   :  { %678 = vmatprep.subr.bf16.mxu1 %v769_v0  ;;  %209 = vmatprep.subr.bf16.mxu0 %v729_v14  ;;  %v764_v48 = vld [vmem:[%s985_s3 + $0x48] sm:$0xff]   ;;  %v766_v50 = vld [vmem:[%s985_s3 + $0x80] sm:$0xff]  }
  0x11   :  { %v765_v49 = vld [vmem:[%s985_s3 + $0x8] sm:$0xff]   ;;  %v767_v51 = vld [vmem:[%s985_s3 + $0x40] sm:$0xff]  }
  0x12   :  { %v768_v52 = vld [vmem:[%s985_s3] sm:$0xff]  }
  0x13   :  { %679 = vmatpush3.bf16.msra.mxu1 %v731_v15  ;;  %210 = vmatpush1.bf16.msra.mxu0 %v732_v16  ;;  %v56_v56 = vld [vmem:[%s987_s2] sm:$0x7] }
  0x14   :  { %680 = vmatprep.subr.bf16.mxu1 %v769_v0  ;;  %211 = vmatprep.subr.bf16.mxu0 %v733_v17  ;;  %v69_v57 = vrot.slane %v56_v56, %v68_v55  ;;  %v61_v1 = vrot.slane %v56_v56, %v60_v59  ;;  %v605_v25 = vld [vmem:[%s988_s4] ss:$0 sm:$0xff] }
  0x17   :  { %681 = vmatpush3.bf16.msra.mxu1 %v735_v18  ;;  %212 = vmatpush1.bf16.msra.mxu0 %v736_v19 }
  0x18   :  { %682 = vmatprep.subr.bf16.mxu1 %v769_v0  ;;  %213 = vmatprep.subr.bf16.mxu0 %v737_v20 }
  0x1b   :  { %683 = vmatpush3.bf16.msra.mxu1 %v739_v21  ;;  %214 = vmatpush1.bf16.msra.mxu0 %v740_v22 }
  0x1c   :  { %684 = vmatprep.subr.bf16.mxu1 %v769_v0  ;;  %215 = vmatprep.subr.bf16.mxu0 %v741_v23 }
  0x1f   :  { %685 = vmatpush3.bf16.msra.mxu1 %v743_v24  ;;  %216 = vmatpush1.bf16.msra.mxu0 %v744_v27 }
  0x20   :  { %690 = vmatprep.subr.bf16.mxu1 %v769_v0  ;;  %639 = vmatprep.subr.bf16.mxu0 %v746_v28 }
  0x22   :  { %687 = vmatmul.mubr.bf16.vlgmr.msra.gmra.mxu1 %v23_v29  ;;  %234 = vmatmul.mubr.bf16.vlgmr.msra.gmra.mxu0 %v23_v29 }
  0x23   :  { %691 = vmatpush3.bf16.msra.mxu1 %v745_v30  ;;  %640 = vmatpush3.bf16.msra.mxu0 %v747_v31 }
  0x24   :  { %692 = vmatprep.subr.bf16.mxu1 %v769_v0  ;;  %641 = vmatprep.subr.bf16.mxu0 %v749_v33 }
  0x25   :  { %706 = vmatprep.mubr.msk.bf16.mxu1 %vm770_vm0, %v769_v0 }
  0x27   :  { %693 = vmatpush3.bf16.msra.mxu1 %v748_v32  ;;  %642 = vmatpush3.bf16.msra.mxu0 %v750_v34 }
  0x28   :  { %694 = vmatprep.subr.bf16.mxu1 %v769_v0  ;;  %643 = vmatprep.subr.bf16.mxu0 %v752_v35 }
  0x2b   :  { %695 = vmatpush3.bf16.msra.mxu1 %v751_v36  ;;  %644 = vmatpush3.bf16.msra.mxu0 %v753_v37 }
  0x2c   :  { %696 = vmatprep.subr.bf16.mxu1 %v769_v0  ;;  %645 = vmatprep.subr.bf16.mxu0 %v755_v38 }
  0x2f   :  { %697 = vmatpush3.bf16.msra.mxu1 %v754_v39  ;;  %646 = vmatpush3.bf16.msra.mxu0 %v756_v40 }
  0x30   :  { %698 = vmatprep.subr.bf16.mxu1 %v769_v0  ;;  %647 = vmatprep.subr.bf16.mxu0 %v758_v41 }
  0x33   :  { %699 = vmatpush3.bf16.msra.mxu1 %v757_v42  ;;  %648 = vmatpush3.bf16.msra.mxu0 %v759_v43 }
  0x34   :  { %700 = vmatprep.subr.bf16.mxu1 %v769_v0  ;;  %649 = vmatprep.subr.bf16.mxu0 %v761_v45 }
  0x37   :  { %701 = vmatpush3.bf16.msra.mxu1 %v760_v44  ;;  %650 = vmatpush3.bf16.msra.mxu0 %v762_v46 }
  0x38   :  { %702 = vmatprep.subr.bf16.mxu1 %v769_v0  ;;  %651 = vmatprep.subr.bf16.mxu0 %v764_v48 }
  0x3b   :  { %703 = vmatpush3.bf16.msra.mxu1 %v763_v47  ;;  %652 = vmatpush3.bf16.msra.mxu0 %v765_v49 }
  0x3c   :  { %704 = vmatprep.subr.bf16.mxu1 %v769_v0  ;;  %653 = vmatprep.subr.bf16.mxu0 %v767_v51  ;;  %v65_v0 = vrot.slane %v56_v56, %v64_v58 }
  0x3f   :  { %705 = vmatpush3.bf16.msra.mxu1 %v766_v50  ;;  %654 = vmatpush3.bf16.msra.mxu0 %v768_v52 }
  0xe2   :  { %v278_v60 = vpop.f32.mrf.mxu1  ;;  %v235_v62 = vpop.f32.mrf.mxu0 }
  0xe3   :  { %v279_v61 = vadd.f32 %v278_v60, %v69_v57  ;;  %v236_v10 = vadd.f32 %v235_v62, %v61_v1 }
  0xe4   :  { %v688_v63 = vpop.f32.mrf.mxu1  ;;  %v237_v2 = vpop.f32.mrf.mxu0 }
  0xe5   :  { %v287_v4 = vmax.f32 %v279_v61, 0.0  ;;  %v238_v7 = vadd.f32 %v237_v2, %v65_v0  ;;  %v285_v18 = vmax.f32 %v236_v10, 0.0 }
  0xe6   :  { %v281_v3 = vpop.f32.mrf.mxu1  ;;  %v239_v6 = vpop.f32.mrf.mxu0 }
  0xe7   :  { %v282_v5 = vadd.f32 %v281_v3, %v69_v57  ;;  %v240_v8 = vadd.f32 %v239_v6, %v61_v1  ;;  %v286_v16 = vmax.f32 %v238_v7, 0.0 }
  0xe8   :  { %v689_v9 = vpop.f32.mrf.mxu1  ;;  %v241_v12 = vpop.f32.mrf.mxu0 }
  0xe9   :  { %v290_v11 = vmax.f32 %v282_v5, 0.0  ;;  %v242_v13 = vadd.f32 %v241_v12, %v65_v0  ;;  %v288_v15 = vmax.f32 %v240_v8, 0.0 }
  0xeb   :  { %v293_v14 = vpack.c.bf16 %v290_v11, %v287_v4  ;;  %v289_v17 = vmax.f32 %v242_v13, 0.0  ;;  %v291_v20 = vpack.c.bf16 %v288_v15, %v285_v18 }
  0xed   :  { %707 = vmatmul.mubr.bf16.vlgmr.msra.gmra.mxu1 %v293_v14  ;;  %v292_v19 = vpack.c.bf16 %v289_v17, %v286_v16 }
  0xef   :  { %525 = vmatprep.mubr.bf16.mxu0 %v292_v19 }
  0xf0   :  { %526 = vmatmul.mubr.bf16.vlgmr.msra.gmra.mxu0 %v291_v20 }
 0x1ad   :  { %v568_v21 = vpop.f32.mrf.mxu1 }
 0x1af   :  { %v708_v22 = vpop.f32.mrf.mxu1 }
 0x1b0   :  { %v655_v23 = vpop.f32.mrf.mxu0 }
 0x1b1   :  { %v571_v24 = vpop.f32.mrf.mxu1 }
 0x1b2   :  { %v656_v26 = vpop.f32.mrf.mxu0 }
 0x1b3   :  { %v709_v27 = vpop.f32.mrf.mxu1  ;;  %v657_v28 = vadd.f32 %v656_v26, %v655_v23 }
 0x1b4   :  { %v658_v29 = vpop.f32.mrf.mxu0 }
 0x1b5   :  { %v528_v30 = vadd.f32 %v657_v28, %v605_v25 }
 0x1b6   :  { %v659_v31 = vpop.f32.mrf.mxu0 }
 0x1b7   :  { %v569_v32 = vadd.f32 %v568_v21, %v528_v30  ;;  %v660_v33 = vadd.f32 %v659_v31, %v658_v29 }
 0x1b9   :  { %575 = vst [vmem:[%s989_s5] sm:$0xff] %v569_v32  ;;  %v531_v34 = vadd.f32 %v660_v33, %v605_v25 }
 0x1bb   :  { %v572_v35 = vadd.f32 %v571_v24, %v531_v34 }
 0x1bd   :  { %576 = vst [vmem:[%s989_s5 + $0x8] sm:$0xff] %v572_v35 }

</bundles_post_ra>
